<compile_context>
chip_gen: v6e
topology: v6e:2x2x1
jax: 0.10.0
libtpu: 0.0.40
codegen_flags: <defaults>
</compile_context>

<pallas_src>
import functools
import math

import jax
import jax.numpy as jnp
from jax.experimental import pallas as pl
from jax.experimental.pallas import tpu as pltpu


def _residual_dropout_kernel(seed_ref, x_ref, sub_ref, o_ref, *,
                             p: float, tile_rows: int, hidden: int):
    """One (tile_rows, hidden) tile: out = x + dropout(sublayer, p)."""
    if p <= 0.0:
        # Eval mode / p == 0: dropout is the identity.
        o_ref[...] = (x_ref[...] + sub_ref[...]).astype(o_ref.dtype)
    elif p >= 1.0:
        # nn.Dropout(p=1) zeroes the sublayer entirely.
        o_ref[...] = x_ref[...]
    else:
        shape = x_ref.shape  # (tile_rows, hidden)
        dt = x_ref.dtype

        # Global element id for this tile (deterministic, tiling-independent).
        row0 = pl.program_id(0) * tile_rows
        rows = row0 + jax.lax.broadcasted_iota(jnp.int32, shape, 0)
        cols = jax.lax.broadcasted_iota(jnp.int32, shape, 1)
        gid = rows * hidden + cols

        # lowbias32 integer hash of (gid + seed) -> uniform uint32.
        z = gid.astype(jnp.uint32) + seed_ref[0].astype(jnp.uint32)
        z = z ^ (z >> 16)
        z = z * jnp.uint32(0x7FEB352D)
        z = z ^ (z >> 15)
        z = z * jnp.uint32(0x846CA68B)
        z = z ^ (z >> 16)

        # Keep with probability (1 - p): compare the top 31 bits (signed-safe)
        # against an integer threshold. P(top31 < thresh) == p.
        thresh = min(int(round(p * (1 << 31))), (1 << 31) - 1)
        keep = (z >> 1).astype(jnp.int32) >= jnp.int32(thresh)

        scale = jnp.asarray(1.0 / (1.0 - p), dtype=dt)
        zero = jnp.asarray(0, dtype=dt)
        dropped = jnp.where(keep, sub_ref[...] * scale, zero)
        o_ref[...] = (x_ref[...] + dropped).astype(o_ref.dtype)


def residual_connection(x, sublayer, *, dropout_p: float = 0.1, seed: int = 0,
                        training: bool = True):
    """x + dropout(sublayer).  Inverted dropout: surviving activations scaled
    by 1/(1-p) during training, identity in eval.
    NOTE: the mask is deterministic per (seed, element index); callers should
    vary `seed` per step / layer to avoid reusing masks."""
    assert x.shape == sublayer.shape and x.dtype == sublayer.dtype
    orig_shape = x.shape
    H = int(orig_shape[-1])
    N = int(math.prod(orig_shape[:-1])) if len(orig_shape) > 1 else 1

    x2 = x.reshape(N, H)
    s2 = sublayer.reshape(N, H)
    p_eff = float(dropout_p) if training else 0.0

    # Row tile sized for ~2 MiB per VMEM buffer (3 arrays x 2 buffers ~= 12 MiB,
    # well inside v7x's 32 MiB default scoped VMEM).
    itemsize = jnp.dtype(x.dtype).itemsize
    bytes_per_row = H * itemsize
    target_bytes = 2 * 1024 * 1024
    tile_rows = max(1, target_bytes // bytes_per_row)
    if tile_rows >= N:
        tile_rows = N                      # full extent: always legal
    else:
        tile_rows = max(8, (tile_rows // 8) * 8)  # (8, 128) sublane constraint

    grid = (pl.cdiv(N, tile_rows),)

    kernel = functools.partial(_residual_dropout_kernel,
                               p=p_eff, tile_rows=tile_rows, hidden=H)

    grid_spec = pltpu.PrefetchScalarGridSpec(
        num_scalar_prefetch=1,  # seed scalar lands in SMEM
        grid=grid,
        in_specs=[
            pl.BlockSpec((tile_rows, H), lambda i, seed_ref: (i, 0)),
            pl.BlockSpec((tile_rows, H), lambda i, seed_ref: (i, 0)),
        ],
        out_specs=pl.BlockSpec((tile_rows, H), lambda i, seed_ref: (i, 0)),
    )

    cost = pl.CostEstimate(
        flops=2 * N * H,
        transcendentals=0,
        bytes_accessed=3 * N * H * itemsize,
    )

    out2 = pl.pallas_call(
        kernel,
        out_shape=jax.ShapeDtypeStruct((N, H), x.dtype),
        grid_spec=grid_spec,
        compiler_params=pltpu.CompilerParams(
            dimension_semantics=("parallel",)),  # element-indexed PRNG => safe
        cost_estimate=cost,
    )(jnp.array([seed], dtype=jnp.int32), x2, s2)

    return out2.reshape(orig_shape)


if __name__ == "__main__":
    # Small transformer-ish shapes: batch=2, seq=8, hidden=128 (lane-aligned).
    key = jax.random.PRNGKey(0)
    kx, ks = jax.random.split(key)
    B, S, H = 2, 8, 128
    x = jax.random.normal(kx, (B, S, H), dtype=jnp.float32)
    sub = jax.random.normal(ks, (B, S, H), dtype=jnp.float32)

    # Eval mode (dropout = identity): must equal x + sub exactly.
    out_eval = residual_connection(x, sub, dropout_p=0.1, training=False)
    jax.block_until_ready(out_eval)
    assert jnp.allclose(out_eval, x + sub, atol=1e-6), "eval-mode mismatch"

    # Training mode with p=0.2: kept elements are x + sub/(1-p), dropped are x.
    p = 0.2
    out_train = residual_connection(x, sub, dropout_p=p, seed=42, training=True)
    jax.block_until_ready(out_train)
    diff = out_train - x
    kept = jnp.abs(diff) > 1e-7
    expected_kept = sub / (1.0 - p)
    ok = jnp.all(jnp.where(kept, jnp.abs(diff - expected_kept) < 1e-4, True))
    assert bool(ok), "training-mode dropout scaling mismatch"
    keep_rate = jnp.mean(kept.astype(jnp.float32))
    assert 0.6 < float(keep_rate) < 0.95, f"unexpected keep rate {keep_rate}"

    print("KERNEL_OK")
</pallas_src>

<mosaic_0001>
module attributes {stable_mosaic.version = 11 : i64} {
  func.func @_residual_dropout_kernel(%arg0: i32, %arg1: memref<1xi32, #tpu.memory_space<smem>>, %arg2: memref<16x128xf32, #tpu.memory_space<vmem>>, %arg3: memref<16x128xf32, #tpu.memory_space<vmem>>, %arg4: memref<16x128xf32, #tpu.memory_space<vmem>>) attributes {dimension_semantics = [#tpu.dimension_semantics<parallel>], iteration_bounds = array<i64: 1>, scalar_prefetch = 1 : i64, scratch_operands = 0 : i64, tpu.core_type = #tpu.core_type<tc>, window_params = [{transform_indices = @transform_0, window_bounds = array<i64: 16, 128>}, {transform_indices = @transform_1, window_bounds = array<i64: 16, 128>}, {transform_indices = @transform_2, window_bounds = array<i64: 16, 128>}]} {
    %c0 = arith.constant 0 : index
    %c0_0 = arith.constant 0 : index
    %0 = vector.load %arg2[%c0, %c0_0] : memref<16x128xf32, #tpu.memory_space<vmem>>, vector<16x128xf32>
    %c0_1 = arith.constant 0 : index
    %c0_2 = arith.constant 0 : index
    %1 = vector.load %arg3[%c0_1, %c0_2] : memref<16x128xf32, #tpu.memory_space<vmem>>, vector<16x128xf32>
    %2 = arith.addf %0, %1 : vector<16x128xf32>
    %c0_3 = arith.constant 0 : index
    %c0_4 = arith.constant 0 : index
    %3 = vector.load %arg4[%c0_3, %c0_4] : memref<16x128xf32, #tpu.memory_space<vmem>>, vector<16x128xf32>
    tpu.vector_store %arg4[%c0_3, %c0_4], %2 {strides = array<i32>} : memref<16x128xf32, #tpu.memory_space<vmem>>, vector<16x128xf32>,
    return
  }
  func.func @transform_0(%arg0: i32, %arg1: memref<1xi32, #tpu.memory_space<smem>>) -> (i32, i32) {
    %c0_i32 = arith.constant 0 : i32
    %c0_i32_0 = arith.constant 0 : i32
    return %arg0, %c0_i32 : i32, i32
  }
  func.func @transform_1(%arg0: i32, %arg1: memref<1xi32, #tpu.memory_space<smem>>) -> (i32, i32) {
    %c0_i32 = arith.constant 0 : i32
    %c0_i32_0 = arith.constant 0 : i32
    return %arg0, %c0_i32 : i32, i32
  }
  func.func @transform_2(%arg0: i32, %arg1: memref<1xi32, #tpu.memory_space<smem>>) -> (i32, i32) {
    %c0_i32 = arith.constant 0 : i32
    %c0_i32_0 = arith.constant 0 : i32
    return %arg0, %c0_i32 : i32, i32
  }
}

</mosaic_0001>

<bundles_post_ra>
// kernel: tpu_custom_call.1
= control target key start
LH: loop header
LB: loop body
LE: loop exit
PB: predicated region body
PF: predicated region fallthrough
CT: control target
= control target key end

     0   :  { %9 = vsyncpa [#allocation5], 0  ;;  %s182_s0 = inlined_call_operand.<no memory space> [shape: s32[1], index: 0, kind: input, shape index: {}]   ;;  %s183_s1 = inlined_call_operand.hbm [shape: f32[16,128], index: 1, kind: input, shape index: {}]   ;;  %s184_s2 = inlined_call_operand.hbm [shape: f32[16,128], index: 2, kind: input, shape index: {}]   ;;  %s185_s3 = inlined_call_operand.hbm [shape: f32[16,128], index: 3, kind: output, shape index: {}]  }
   0x1   :  { %10 = vsyncpa [#allocation8], 0 }
   0x2   :  { %11 = vsyncpa [#allocation6], 0  ;;  %s139_s12 = smov [#allocation4]  }
   0x3   :  { %s17_s13 = sshll.u32 %s139_s12, 4  ;;  %s18_s13 = int_to_ptr.vmem [resolvable:$true] %s17_s13 }
   0x4   :  { %s81_s14 = scalar_lea.vmem %s18_s13, 256  ;;  %p86_p1 = scmp.lt.s32.totalorder %s18_s13, %s18_s13 }
   0x5   :  { %p82_p0 = scmp.ne.s32.totalorder %s18_s13, %s81_s14  ;;  %p87_p2 = scmp.lt.s32.totalorder %s81_s14, %s81_s14 }
   0x7   :  { %p88_p3 = por %p87_p2, %p86_p1 }
   0x9   :  { %p89_p4 = pnand %p88_p3, %p82_p0 }
   0xb   :  { %92 = shalt.err (!%p89_p4)
}
   0xc   :  { %s140_s0 = smov 128   ;;  %s141_s15 = smov 8  }
   0xd   :  { %23 = dma.hbm_to_vmem [thread:$0]  %s183_s1, 256, %s18_s13, [#allocation5], %s140_s0, %s140_s0, %s141_s15  }
   0xe   :  { %s142_s18 = smov [#allocation7]  }
   0xf   :  { %s29_s19 = sshll.u32 %s142_s18, 4  ;;  %s30_s19 = int_to_ptr.vmem [resolvable:$true] %s29_s19 }
  0x10   :  { %s101_s20 = scalar_lea.vmem %s30_s19, 256  ;;  %p106_p6 = scmp.lt.s32.totalorder %s30_s19, %s30_s19 }
  0x11   :  { %p102_p5 = scmp.ne.s32.totalorder %s30_s19, %s101_s20  ;;  %p107_p7 = scmp.lt.s32.totalorder %s101_s20, %s101_s20 }
  0x13   :  { %p108_p8 = por %p107_p7, %p106_p6 }
  0x15   :  { %p109_p9 = pnand %p108_p8, %p102_p5 }
  0x17   :  { %112 = shalt.err (!%p109_p9)
}
  0x18   :  { %35 = dma.hbm_to_vmem [thread:$0]  %s184_s2, 256, %s30_s19, [#allocation8], %s140_s0, %s140_s0, %s141_s15  }
  0x19   :  { %133 = dma.done.wait [#allocation5], 256  }
  0x1a   :  { %134 = vsyncadd [#allocation5], 4294967040 }
  0x1b   :  { %135 = dma.done.wait [#allocation8], 256  }
  0x1c   :  { %136 = vsyncadd [#allocation8], 4294967040  ;;  %s143_s1 = smov [#allocation9]   ;;  %v42_v0 = vld [vmem:[#allocation4] sm:$0xff]  ;;  %v44_v1 = vld [vmem:[#allocation7] sm:$0xff] }
  0x1d   :  { %s55_s23 = sshll.u32 %s143_s1, 4  ;;  %v43_v2 = vld [vmem:[#allocation4 + $0x8] sm:$0xff]  ;;  %v46_v3 = vadd.f32 %v44_v1, %v42_v0  ;;  %v45_v4 = vld [vmem:[#allocation7 + $0x8] sm:$0xff]  ;;  %s56_s23 = int_to_ptr.vmem [resolvable:$true] %s55_s23 }
  0x1e   :  { %v47_v5 = vadd.f32 %v45_v4, %v43_v2  ;;  %s113_s24 = scalar_lea.vmem %s56_s23, 256  ;;  %p118_p11 = scmp.lt.s32.totalorder %s56_s23, %s56_s23 }
  0x1f   :  { %48 = vst [vmem:[#allocation9] sm:$0xff] %v46_v3  ;;  %p114_p10 = scmp.ne.s32.totalorder %s56_s23, %s113_s24  ;;  %p119_p12 = scmp.lt.s32.totalorder %s113_s24, %s113_s24 }
  0x20   :  { %49 = vst [vmem:[#allocation9 + $0x8] sm:$0xff] %v47_v5 }
  0x21   :  { %p120_p13 = por %p119_p12, %p118_p11 }
  0x23   :  { %p121_p0 = pnand %p120_p13, %p114_p10 }
  0x25   :  { %124 = shalt.err (!%p121_p0)
}
  0x26   :  { %61 = dma.vmem_to_hbm [thread:$0]  %s56_s23, 256, %s185_s3, [#allocation6], %s140_s0, %s140_s0, %s141_s15  }
  0x27   :  { %137 = dma.done.wait [#allocation6], 256  }
  0x28   :  { %138 = vsyncadd [#allocation6], 4294967040 }
  0x29   :  { %65 = vsyncpa [#allocation5], 1 }
  0x2a   :  { %66 = vsyncpa [#allocation8], 1 }
  0x2b   :  { %67 = vsyncpa [#allocation6], 1 }

</bundles_post_ra>
